<compile_context>
chip_gen: v7x
topology: tpu7x:2x2x1
jax: 0.10.0
libtpu: 0.0.40
codegen_flags: <defaults>
</compile_context>

<pallas_src>
import functools

import jax
import jax.numpy as jnp
from jax import lax
from jax.experimental import pallas as pl
from jax.experimental.pallas import tpu as pltpu

LANES = 128
SUBLANES = 8
CONFIDENCE_MARGIN = 5.0


@functools.lru_cache(maxsize=8)
def _ref_stats(seed: int):
    """Mean / unbiased std of the deterministic N(0,1) reference sample."""
    ref = jax.random.normal(jax.random.PRNGKey(seed), (5000,), dtype=jnp.float32)
    return float(jnp.mean(ref)), float(jnp.std(ref, ddof=1))


def _sublane_multiple(dtype) -> int:
    # f32 -> 8, bf16/f16 -> 16, int8/uint8 -> 32 (vreg sublane packing).
    return max(8, 32 // jnp.dtype(dtype).itemsize)


def _chip_generation() -> int:
    """Best-effort TPU generation (5, 6, 7, ...); 0 when unknown."""
    try:
        kind = str(jax.devices()[0].device_kind)   # e.g. "TPU v5e", "TPU v6e", "TPU7x"
        digits = [c for c in kind if c.isdigit()]
        return int(digits[0]) if digits else 0
    except Exception:
        return 0


def _dev_loss_kernel(yp_ref, yt_ref, acc_ref, *, ref_mean, inv_std, rows,
                     tile_r, tiles_per_slice, need_mask):
    """Accumulate the per-tile loss sum into a resident (8, 128) f32 block."""
    t = pl.program_id(1)

    @pl.when(t == 0)
    def _init():
        acc_ref[...] = jnp.zeros_like(acc_ref)

    yp = yp_ref[...].astype(jnp.float32)
    yt = yt_ref[...].astype(jnp.float32)

    dev = (yp - ref_mean) * inv_std
    inlier = jnp.abs(dev)
    outlier = jnp.maximum(CONFIDENCE_MARGIN - dev, 0.0)      # already >= 0
    loss = inlier + yt * (outlier - inlier)                  # == (1-yt)*in + yt*out

    if need_mask:                                            # static decision
        gt = pl.program_id(0) * tiles_per_slice + t          # global row-tile index
        valid = rows - gt * tile_r                           # valid rows (may be <= 0)
        row = lax.broadcasted_iota(jnp.int32, loss.shape, 0)
        loss = jnp.where(row < valid, loss, 0.0)

    # Layout-preserving fold of the (tile_r, 128) tile into (8, 128): pure VPU
    # vector adds; the cross-lane reduce is deferred to the wrapper.
    acc_ref[...] += loss.reshape(tile_r // SUBLANES, SUBLANES, LANES).sum(axis=0)


def deviation_loss(y_pred, y_true, *, ref_seed: int = 0,
                   max_tile_rows=None, num_slices=None):
    """Pallas TPU implementation of DeviationLoss.forward."""
    y_pred = jnp.asarray(y_pred).reshape(-1)
    y_true = jnp.asarray(y_true).reshape(-1)
    assert y_pred.shape == y_true.shape

    if y_pred.dtype not in (jnp.float32, jnp.bfloat16, jnp.float16):
        y_pred = y_pred.astype(jnp.float32)
    if y_true.dtype == jnp.bool_:
        y_true = y_true.astype(jnp.int8)             # 1 B/elem, upcast in-kernel
    if y_true.dtype not in (jnp.float32, jnp.bfloat16, jnp.float16,
                            jnp.int8, jnp.uint8):
        y_true = y_true.astype(jnp.float32)

    n = y_pred.shape[0]
    ref_mean, ref_std = _ref_stats(ref_seed)
    inv_std = 1.0 / ref_std

    gen = _chip_generation()
    if max_tile_rows is None:
        # TODO(synk): try 8192-row tiles on v7x (needs ~48 MiB scoped VMEM).
        max_tile_rows = 4096 if gen >= 7 else 2048
    if num_slices is None:
        num_slices = 2 if gen >= 7 else 1            # 2 TensorCores/chip on v7x

    rows = n // LANES                                # 128-aligned prefix rows
    row_mult = max(_sublane_multiple(y_pred.dtype), _sublane_multiple(y_true.dtype))

    kernel_sum = jnp.float32(0.0)
    covered = 0
    if rows >= row_mult:
        tile_r = max(row_mult, min((max_tile_rows // row_mult) * row_mult,
                                   (rows // row_mult) * row_mult))
        num_tiles = pl.cdiv(rows, tile_r)
        n_slices = max(1, min(num_slices, num_tiles))
        tps = pl.cdiv(num_tiles, n_slices)           # tiles per parallel slice
        need_clamp = n_slices * tps != num_tiles     # padded (duplicate) grid steps
        need_mask = need_clamp or (rows % tile_r != 0)
        covered = rows * LANES

        # Lane-dense (rows, 128) view of the 128-aligned prefix.  When
        # n % 128 == 0 this is a free reshape of the whole array (no pad copy);
        # otherwise the prefix slice is at worst the cost of the old pad copy.
        yp2 = y_pred[:covered].reshape(rows, LANES)
        yt2 = y_true[:covered].reshape(rows, LANES)

        if need_clamp:
            in_idx = lambda s, t: (jnp.minimum(s * tps + t, num_tiles - 1), 0)
        else:
            in_idx = lambda s, t: (s * tps + t, 0)

        # Scoped-VMEM budget: double-buffered input blocks + headroom for the
        # f32 compute intermediates; capped so it is safe on every generation.
        blk_in = tile_r * LANES * (jnp.dtype(y_pred.dtype).itemsize +
                                   jnp.dtype(y_true.dtype).itemsize)
        f32_blk = tile_r * LANES * 4
        vmem_limit = min(48 << 20, max(16 << 20, 2 * blk_in + 8 * f32_blk + (2 << 20)))

        kernel = functools.partial(
            _dev_loss_kernel, ref_mean=ref_mean, inv_std=inv_std, rows=rows,
            tile_r=tile_r, tiles_per_slice=tps, need_mask=need_mask)

        partials = pl.pallas_call(
            kernel,
            out_shape=jax.ShapeDtypeStruct((n_slices * SUBLANES, LANES), jnp.float32),
            grid=(n_slices, tps),
            in_specs=[pl.BlockSpec((tile_r, LANES), in_idx),
                      pl.BlockSpec((tile_r, LANES), in_idx)],
            out_specs=pl.BlockSpec((SUBLANES, LANES), lambda s, t: (s, 0)),
            compiler_params=pltpu.CompilerParams(
                dimension_semantics=("parallel", "arbitrary"),
                vmem_limit_bytes=int(vmem_limit)),
        )(yp2, yt2)
        kernel_sum = jnp.sum(partials, dtype=jnp.float32)

    if covered < n:
        # Ragged tail (< 128 elems) or tiny-n fallback: tiny XLA reduction.
        yp_t = y_pred[covered:].astype(jnp.float32)
        yt_t = y_true[covered:].astype(jnp.float32)
        dev = (yp_t - ref_mean) * inv_std
        inl = jnp.abs(dev)
        outl = jnp.maximum(CONFIDENCE_MARGIN - dev, 0.0)
        tail_sum = jnp.sum(inl + yt_t * (outl - inl), dtype=jnp.float32)
    else:
        tail_sum = jnp.float32(0.0)

    return (kernel_sum + tail_sum) / n


def _reference(y_pred, y_true, ref_mean, ref_std):
    dev = (y_pred - ref_mean) / ref_std
    inlier = jnp.abs(dev)
    outlier = jnp.abs(jnp.maximum(CONFIDENCE_MARGIN - dev, 0.0))
    return jnp.mean((1.0 - y_true) * inlier + y_true * outlier)


if __name__ == "__main__":
    key = jax.random.PRNGKey(0)
    ref_mean, ref_std = _ref_stats(0)

    def check(n, yp_dtype=jnp.float32, yt_dtype=jnp.float32, **kw):
        kp, kt = jax.random.split(jax.random.fold_in(key, n))
        y_pred = (jax.random.normal(kp, (n,), jnp.float32) * 2.0).astype(yp_dtype)
        y_true_f = jax.random.bernoulli(kt, 0.3, (n,)).astype(jnp.float32)
        y_true = y_true_f.astype(yt_dtype)
        got = jax.block_until_ready(deviation_loss(y_pred, y_true, ref_seed=0, **kw))
        want = _reference(y_pred.astype(jnp.float32), y_true_f, ref_mean, ref_std)
        assert jnp.allclose(got, want, rtol=1e-5, atol=1e-5), (n, got, want)

    check(2048)                                      # aligned, single full tile
    check(1224)                                      # kernel prefix + masked partial block + XLA tail
    check(5248, max_tile_rows=8, num_slices=2)       # multi-tile grid + 2-slice parallel axis
    check(5120, max_tile_rows=8, num_slices=2)       # odd tile count -> clamped duplicate tile
    check(4096, yp_dtype=jnp.bfloat16, yt_dtype=jnp.int8)  # narrow dtypes upcast in-kernel
    check(4096, yt_dtype=jnp.bool_)                  # bool labels (stored as int8)
    check(50)                                        # n < 128: pure-XLA fallback path

    print("KERNEL_OK")
</pallas_src>

<mosaic_0001>
module attributes {stable_mosaic.version = 11 : i64} {
  func.func @_dev_loss_kernel(%arg0: i32, %arg1: i32, %arg2: memref<16x128xf32, #tpu.memory_space<vmem>>, %arg3: memref<16x128xf32, #tpu.memory_space<vmem>>, %arg4: memref<8x128xf32, #tpu.memory_space<vmem>>) attributes {dimension_semantics = [#tpu.dimension_semantics<parallel>, #tpu.dimension_semantics<arbitrary>], iteration_bounds = array<i64: 1, 1>, scalar_prefetch = 0 : i64, scratch_operands = 0 : i64, tpu.core_type = #tpu.core_type<tc>, window_params = [{transform_indices = @transform_0, window_bounds = array<i64: 16, 128>}, {transform_indices = @transform_1, window_bounds = array<i64: 16, 128>}, {transform_indices = @transform_2, window_bounds = array<i64: 8, 128>}]} {
    %c0_i32 = arith.constant 0 : i32
    %0 = arith.cmpi eq, %arg1, %c0_i32 : i32
    %1 = arith.extui %0 : i1 to i32
    %c0_i32_0 = arith.constant 0 : i32
    %2 = arith.cmpi ne, %1, %c0_i32_0 : i32
    scf.if %2 {
      %cst_12 = arith.constant 0.000000e+00 : f32
      %22 = vector.broadcast %cst_12 : f32 to vector<8x128xf32>
      %c0_13 = arith.constant 0 : index
      %c0_14 = arith.constant 0 : index
      %23 = vector.load %arg4[%c0_13, %c0_14] : memref<8x128xf32, #tpu.memory_space<vmem>>, vector<8x128xf32>
      tpu.vector_store %arg4[%c0_13, %c0_14], %22 {strides = array<i32>} : memref<8x128xf32, #tpu.memory_space<vmem>>, vector<8x128xf32>,
    } else {
    }
    %c0 = arith.constant 0 : index
    %c0_1 = arith.constant 0 : index
    %3 = vector.load %arg2[%c0, %c0_1] : memref<16x128xf32, #tpu.memory_space<vmem>>, vector<16x128xf32>
    %c0_2 = arith.constant 0 : index
    %c0_3 = arith.constant 0 : index
    %4 = vector.load %arg3[%c0_2, %c0_3] : memref<16x128xf32, #tpu.memory_space<vmem>>, vector<16x128xf32>
    %cst = arith.constant -0.0114264032 : f32
    %5 = vector.broadcast %cst : f32 to vector<16x128xf32>
    %6 = arith.subf %3, %5 : vector<16x128xf32>
    %cst_4 = arith.constant 0.981927633 : f32
    %7 = vector.broadcast %cst_4 : f32 to vector<16x128xf32>
    %8 = arith.mulf %6, %7 : vector<16x128xf32>
    %9 = math.absf %8 : vector<16x128xf32>
    %cst_5 = arith.constant 5.000000e+00 : f32
    %10 = vector.broadcast %cst_5 : f32 to vector<16x128xf32>
    %11 = arith.subf %10, %8 : vector<16x128xf32>
    %cst_6 = arith.constant 0.000000e+00 : f32
    %12 = vector.broadcast %cst_6 : f32 to vector<16x128xf32>
    %13 = arith.maximumf %11, %12 : vector<16x128xf32>
    %14 = arith.subf %13, %9 : vector<16x128xf32>
    %15 = arith.mulf %4, %14 : vector<16x128xf32>
    %16 = arith.addf %9, %15 : vector<16x128xf32>
    %c0_7 = arith.constant 0 : index
    %c0_8 = arith.constant 0 : index
    %17 = vector.load %arg4[%c0_7, %c0_8] : memref<8x128xf32, #tpu.memory_space<vmem>>, vector<8x128xf32>
    %18 = vector.shape_cast %16 : vector<16x128xf32> to vector<2x8x128xf32>
    %cst_9 = arith.constant dense<0.000000e+00> : vector<8x128xf32>
    %19 = vector.multi_reduction <add>, %18, %cst_9 [0] : vector<2x8x128xf32> to vector<8x128xf32>
    %20 = arith.addf %17, %19 : vector<8x128xf32>
    %c0_10 = arith.constant 0 : index
    %c0_11 = arith.constant 0 : index
    %21 = vector.load %arg4[%c0_10, %c0_11] : memref<8x128xf32, #tpu.memory_space<vmem>>, vector<8x128xf32>
    tpu.vector_store %arg4[%c0_10, %c0_11], %20 {strides = array<i32>} : memref<8x128xf32, #tpu.memory_space<vmem>>, vector<8x128xf32>,
    return
  }
  func.func @transform_0(%arg0: i32, %arg1: i32) -> (i32, i32) {
    %c1_i32 = arith.constant 1 : i32
    %0 = arith.muli %arg0, %c1_i32 : i32
    %1 = arith.addi %0, %arg1 : i32
    %c0_i32 = arith.constant 0 : i32
    %c0_i32_0 = arith.constant 0 : i32
    return %1, %c0_i32 : i32, i32
  }
  func.func @transform_1(%arg0: i32, %arg1: i32) -> (i32, i32) {
    %c1_i32 = arith.constant 1 : i32
    %0 = arith.muli %arg0, %c1_i32 : i32
    %1 = arith.addi %0, %arg1 : i32
    %c0_i32 = arith.constant 0 : i32
    %c0_i32_0 = arith.constant 0 : i32
    return %1, %c0_i32 : i32, i32
  }
  func.func @transform_2(%arg0: i32, %arg1: i32) -> (i32, i32) {
    %c0_i32 = arith.constant 0 : i32
    %c0_i32_0 = arith.constant 0 : i32
    return %arg0, %c0_i32 : i32, i32
  }
}

</mosaic_0001>

<bundles_post_ra>
// kernel: tpu_custom_call.1
= control target key start
LH: loop header
LB: loop body
LE: loop exit
PB: predicated region body
PF: predicated region fallthrough
CT: control target
= control target key end

     0   :  { %7 = vsyncpa [#allocation3], 0  ;;  %s233_s0 = inlined_call_operand.hbm [shape: f32[16,128], index: 0, kind: input, shape index: {}]   ;;  %s234_s1 = inlined_call_operand.hbm [shape: f32[16,128], index: 1, kind: input, shape index: {}]   ;;  %s235_s2 = inlined_call_operand.hbm [shape: f32[8,128], index: 2, kind: output, shape index: {}]  }
   0x1   :  { %8 = vsyncpa [#allocation6], 0 }
   0x2   :  { %9 = vsyncpa [#allocation4], 0  ;;  %s177_s9 = smov [#allocation2]   ;;  %s105_s13 = scalar_lea.hbm %s233_s0, 256 }
   0x3   :  { %s19_s10 = sshll.u32 %s177_s9, 4  ;;  %p106_p0 = scmp.ne.s32.totalorder %s233_s0, %s105_s13  ;;  %s20_s10 = int_to_ptr.vmem [resolvable:$true] %s19_s10 }
   0x4   :  { %p109_p1 = scmp.lt.u32.totalorder %s105_s13, %s233_s0 }
   0x6   :  { %p111_p2 = pnand %p109_p1, %p106_p0 }
   0x8   :  { %114 = shalt.err (!%p111_p2)
}
   0x9   :  { %s115_s18 = scalar_lea.vmem %s20_s10, 256  ;;  %p120_p4 = scmp.lt.s32.totalorder %s20_s10, %s20_s10 }
   0xa   :  { %p116_p3 = scmp.ne.s32.totalorder %s20_s10, %s115_s18  ;;  %p121_p5 = scmp.lt.s32.totalorder %s115_s18, %s115_s18 }
   0xc   :  { %p122_p6 = por %p121_p5, %p120_p4 }
   0xe   :  { %p123_p7 = pnand %p122_p6, %p116_p3 }
  0x10   :  { %126 = shalt.err (!%p123_p7)
}
  0x11   :  { %s178_s19 = smov 128   ;;  %s179_s20 = smov 8  }
  0x12   :  { %25 = dma.hbm_to_vmem [thread:$0]  %s233_s0, 256, %s20_s10, [#allocation3], %s178_s19, %s178_s19, %s179_s20  }
  0x13   :  { %s180_s23 = smov [#allocation5]   ;;  %s127_s27 = scalar_lea.hbm %s234_s1, 256 }
  0x14   :  { %s35_s24 = sshll.u32 %s180_s23, 4  ;;  %p128_p8 = scmp.ne.s32.totalorder %s234_s1, %s127_s27  ;;  %s36_s24 = int_to_ptr.vmem [resolvable:$true] %s35_s24 }
  0x15   :  { %p131_p9 = scmp.lt.u32.totalorder %s127_s27, %s234_s1 }
  0x17   :  { %p133_p10 = pnand %p131_p9, %p128_p8 }
  0x19   :  { %136 = shalt.err (!%p133_p10)
}
  0x1a   :  { %s137_s4 = scalar_lea.vmem %s36_s24, 256  ;;  %p142_p12 = scmp.lt.s32.totalorder %s36_s24, %s36_s24 }
  0x1b   :  { %p138_p11 = scmp.ne.s32.totalorder %s36_s24, %s137_s4  ;;  %p143_p13 = scmp.lt.s32.totalorder %s137_s4, %s137_s4 }
  0x1d   :  { %p144_p0 = por %p143_p13, %p142_p12 }
  0x1f   :  { %p145_p1 = pnand %p144_p0, %p138_p11 }
  0x21   :  { %148 = shalt.err (!%p145_p1)
}
  0x22   :  { %41 = dma.hbm_to_vmem [thread:$0]  %s234_s1, 256, %s36_s24, [#allocation6], %s178_s19, %s178_s19, %s179_s20  }
  0x23   :  { %171 = dma.done.wait [#allocation3], 256  }
  0x24   :  { %172 = vsyncadd [#allocation3], 4294967040 }
  0x25   :  { %173 = dma.done.wait [#allocation6], 256  }
  0x26   :  { %174 = vsyncadd [#allocation6], 4294967040  ;;  %v57_v0 = vld [vmem:[#allocation2] sm:$0xff]  ;;  %v58_v1 = vld [vmem:[#allocation2 + $0x8] sm:$0xff]  ;;  %s181_s1 = smov [#allocation7]  }
  0x27   :  { %v97_v2 = vadd.f32 0.011426403, %v57_v0  ;;  %v98_v3 = vadd.f32 0.011426403, %v58_v1  ;;  %v59_v12 = vld [vmem:[#allocation5] sm:$0xff]  ;;  %v60_v13 = vld [vmem:[#allocation5 + $0x8] sm:$0xff] }
  0x28   :  { %s87_s6 = sshll.u32 %s181_s1, 4  ;;  %s88_s6 = int_to_ptr.vmem [resolvable:$true] %s87_s6 }
  0x29   :  { %v63_v4 = vmul.f32 0.98192763, %v97_v2  ;;  %v64_v5 = vmul.f32 0.98192763, %v98_v3  ;;  %s149_s7 = scalar_lea.vmem %s88_s6, 128  ;;  %p154_p3 = scmp.lt.s32.totalorder %s88_s6, %s88_s6 }
  0x2a   :  { %p150_p2 = scmp.ne.s32.totalorder %s88_s6, %s149_s7  ;;  %p155_p4 = scmp.lt.s32.totalorder %s149_s7, %s149_s7 }
  0x2b   :  { %v65_v6 = vand.u32 2147483647, %v63_v4  ;;  %v66_v7 = vand.u32 2147483647, %v64_v5  ;;  %v67_v8 = vsub.f32 5.0, %v63_v4  ;;  %v68_v9 = vsub.f32 5.0, %v64_v5 }
  0x2c   :  { %p156_p5 = por %p155_p4, %p154_p3 }
  0x2d   :  { %v69_v10 = vmax.f32 %v67_v8, 0.0  ;;  %v70_v11 = vmax.f32 %v68_v9, 0.0 }
  0x2e   :  { %p157_p6 = pnand %p156_p5, %p150_p2 }
  0x2f   :  { %v71_v14 = vsub.f32 %v69_v10, %v65_v6  ;;  %v72_v15 = vsub.f32 %v70_v11, %v66_v7 }
  0x31   :  { %v73_v16 = vmul.f32 %v71_v14, %v59_v12  ;;  %v74_v17 = vmul.f32 %v72_v15, %v60_v13 }
  0x33   :  { %v75_v18 = vadd.f32 %v73_v16, %v65_v6  ;;  %v76_v19 = vadd.f32 %v74_v17, %v66_v7 }
  0x35   :  { %v78_v20 = vadd.f32 %v76_v19, %v75_v18 }
  0x37   :  { %80 = vst [vmem:[#allocation7] sm:$0xff] %v78_v20 }
  0x38   :  { %160 = shalt.err (!%p157_p6)
}
  0x39   :  { %s161_s10 = scalar_lea.hbm %s235_s2, 128 }
  0x3a   :  { %p162_p7 = scmp.ne.s32.totalorder %s235_s2, %s161_s10  ;;  %p165_p8 = scmp.lt.u32.totalorder %s161_s10, %s235_s2 }
  0x3c   :  { %p167_p9 = pnand %p165_p8, %p162_p7 }
  0x3e   :  { %170 = shalt.err (!%p167_p9)
}
  0x3f   :  { %90 = dma.vmem_to_hbm [thread:$0]  %s88_s6, 128, %s235_s2, [#allocation4]  }
  0x40   :  { %175 = dma.done.wait [#allocation4], 128  }
  0x41   :  { %176 = vsyncadd [#allocation4], 4294967168 }
  0x42   :  { %94 = vsyncpa [#allocation3], 1 }
  0x43   :  { %95 = vsyncpa [#allocation6], 1 }
  0x44   :  { %96 = vsyncpa [#allocation4], 1 }

</bundles_post_ra>
